<compile_context>
chip_gen: v7x
topology: tpu7x:2x2x1
jax: 0.10.0
libtpu: 0.0.40
codegen_flags: <defaults>
</compile_context>

<pallas_src>
import jax
import jax.numpy as jnp
from jax.experimental import pallas as pl
from jax.experimental.pallas import tpu as pltpu


def _round_up(x, m):
    return ((x + m - 1) // m) * m


def _nll_loss_kernel(pred_ref, tgt_ref, expand_ref, cls_ref, w_ref,
                     num_ref, den_ref, num_acc, cnt_acc):
    t = pl.program_id(1)

    @pl.when(t == 0)
    def _():
        num_acc[...] = jnp.zeros_like(num_acc)
        cnt_acc[...] = jnp.zeros_like(cnt_acc)

    pred = pred_ref[...].astype(jnp.float32)          # (tm, 128) lane-packed log-probs

    # int8 targets -> bf16 (values in [-128, 127] are exact); two-step cast keeps
    # to conversions Mosaic is known to support.
    tgt = tgt_ref[...].astype(jnp.float32).astype(jnp.bfloat16)     # (tm, Rp)
    expand = expand_ref[...].astype(jnp.bfloat16)                   # (Rp, 128)

    # Broadcast each packed row's R targets across their c_pad-lane groups with a
    # single-pass bf16 matmul on the otherwise-idle MXU (exact small integers).
    tgt_lanes = jnp.dot(tgt, expand, preferred_element_type=jnp.float32)   # (tm, 128)

    # Exact match against the resident per-lane class id. ignore_index (-100),
    # row padding (-1) and stale rows of a partial trailing pred tile never match,
    # so they contribute nothing (and stale pred is never touched arithmetically).
    match = tgt_lanes == cls_ref[...]

    # Per-lane partial sums only (VPU adds); the per-lane weight multiply and the
    # cross-lane reduce are deferred to the epilogue (every match on lane l has
    # class l % c_pad, hence a single weight per lane).
    num_acc[...] += jnp.sum(jnp.where(match, pred, 0.0), axis=0, keepdims=True)
    cnt_acc[...] += jnp.sum(match.astype(jnp.float32), axis=0, keepdims=True)

    @pl.when(t == pl.num_programs(1) - 1)
    def _():
        num_ref[...] = jnp.sum(num_acc[...] * w_ref[...], keepdims=True)   # (1, 1)
        den_ref[...] = jnp.sum(cnt_acc[...] * w_ref[...], keepdims=True)   # (1, 1)


def get_loss_pallas(pred, target, trans_feat, weight, *, tm_packed=8192, cores=1):
    """Weighted NLL loss (mean reduction, ignore_index=-100) matching F.nll_loss."""
    del trans_feat  # unused by the reference module's forward
    N, C = pred.shape
    assert 1 <= C <= 128  # TODO(synk): add a fallback tiling for C > 128 classes

    if pred.dtype not in (jnp.float32, jnp.bfloat16):
        pred = pred.astype(jnp.float32)
    target = target.astype(jnp.int32).reshape(N)
    weight = weight.astype(jnp.float32).reshape(C)

    # --- lane-dense packing: pad classes to a power of two dividing 128 and pack
    #     R original rows per 128-lane row (row-major reshape).
    c_pad = max(1, 1 << (C - 1).bit_length())        # next pow2 >= C (<= 128)
    R = 128 // c_pad                                  # original rows per packed row

    # Row alignment: packed-row count must be a multiple of 32 (covers the f32
    # (8,128) and int8 (32,128) sublane tiles). At most R*32 - 1 extra rows.
    tm_packed = _round_up(tm_packed, 32)
    n_align = _round_up(N, R * 32)
    np_arr = n_align // R                             # packed pred rows stored

    per_core = pl.cdiv(np_arr, cores)
    tm = min(tm_packed, _round_up(per_core, 32))
    tiles_per_core = pl.cdiv(np_arr, cores * tm)
    np_grid = cores * tiles_per_core * tm             # packed rows covered by grid

    # --- pred: pad (rows + classes) only as much as required, in one op that XLA
    #     can fuse with the packing reshape / pred's producer. With cores == 1 the
    #     trailing grid block may be partial (clamped DMA), so pred is NOT padded
    #     out to the full grid extent; with cores > 1 pad fully to keep every
    #     core's blocks in bounds.
    n_pred = np_grid * R if cores > 1 else n_align
    if (n_pred != N) or (c_pad != C):
        pred = jnp.pad(pred, ((0, n_pred - N), (0, c_pad - C)))
    pred_packed = pred.reshape(n_pred // R, 128)
    # TODO(synk): for peak perf emit pred already packed as (N // R, 128) (ideally
    # bf16) straight from the producing log_softmax so this reshape/pad never
    # materializes an extra HBM copy of the dominant tensor.

    # --- targets: int8 side-stream, padded out to the full grid extent (cheap)
    #     so partial pred tiles are masked by target == -1.
    tgt_i8 = target.astype(jnp.int8)
    if np_grid * R != N:
        tgt_i8 = jnp.pad(tgt_i8, (0, np_grid * R - N), constant_values=-1)
    tgt_packed = tgt_i8.reshape(np_grid, R)
    Rp = max(R, 8)                                    # keep MXU contraction dim >= 8
    if Rp != R:
        tgt_packed = jnp.pad(tgt_packed, ((0, 0), (0, Rp - R)), constant_values=-1)

    lane = jnp.arange(128, dtype=jnp.int32)
    cls_row = (lane % c_pad).astype(jnp.float32).reshape(1, 128)
    w_row = jnp.pad(weight, (0, c_pad - C))[lane % c_pad].reshape(1, 128)
    expand = (lane[None, :] // c_pad ==
              jnp.arange(Rp, dtype=jnp.int32)[:, None]).astype(jnp.float32)  # (Rp,128)

    pred_bytes = pred_packed.shape[0] * 128 * pred_packed.dtype.itemsize
    tgt_bytes = np_grid * 128                         # int8, lane-padded HBM layout
    tile_bytes = tm * 128 * (pred_packed.dtype.itemsize + 1)
    vmem_limit = int(min(100 << 20, max(32 << 20, 3 * tile_bytes)))

    num_out, den_out = pl.pallas_call(
        _nll_loss_kernel,
        out_shape=(jax.ShapeDtypeStruct((cores, 1), jnp.float32),
                   jax.ShapeDtypeStruct((cores, 1), jnp.float32)),
        grid_spec=pltpu.PrefetchScalarGridSpec(
            num_scalar_prefetch=0,
            grid=(cores, tiles_per_core),
            in_specs=[
                pl.BlockSpec((tm, 128), lambda c, t: (c * tiles_per_core + t, 0)),
                pl.BlockSpec((tm, Rp), lambda c, t: (c * tiles_per_core + t, 0)),
                pl.BlockSpec((Rp, 128), lambda c, t: (0, 0)),   # expansion matrix
                pl.BlockSpec((1, 128), lambda c, t: (0, 0)),    # per-lane class id
                pl.BlockSpec((1, 128), lambda c, t: (0, 0)),    # per-lane weight
            ],
            out_specs=[
                pl.BlockSpec((1, 1), lambda c, t: (c, 0)),      # per-core numerator
                pl.BlockSpec((1, 1), lambda c, t: (c, 0)),      # per-core denominator
            ],
            scratch_shapes=[
                pltpu.VMEM((1, 128), jnp.float32),   # per-lane numerator partials
                pltpu.VMEM((1, 128), jnp.float32),   # per-lane match-count partials
            ],
        ),
        compiler_params=pltpu.CompilerParams(
            dimension_semantics=("parallel", "arbitrary"),
            vmem_limit_bytes=vmem_limit,
        ),
        cost_estimate=pl.CostEstimate(
            flops=np_grid * 128 * (2 * Rp + 4),
            transcendentals=0,
            bytes_accessed=pred_bytes + tgt_bytes + (Rp + 2) * 128 * 4 + 2 * cores * 4,
        ),
    )(pred_packed, tgt_packed, expand, cls_row, w_row)

    return -(jnp.sum(num_out) / jnp.sum(den_out))


def _nll_loss_ref(pred, target, weight, ignore_index=-100):
    # Pure-JAX reference of F.nll_loss(pred, target, weight=weight) (mean).
    valid = target != ignore_index
    t = jnp.where(valid, target, 0)
    w_t = jnp.where(valid, weight[t], 0.0)
    picked = jnp.take_along_axis(pred, t[:, None], axis=1)[:, 0]
    return jnp.sum(-w_t * picked) / jnp.sum(w_t)


if __name__ == "__main__":
    key = jax.random.PRNGKey(0)
    k1, k2, k3 = jax.random.split(key, 3)

    # Test 1: batch=2 point clouds x 64 points, 16 classes -> (N, C) log-probs.
    N, C = 2 * 64, 16
    logits = jax.random.normal(k1, (N, C), dtype=jnp.float32)
    pred = jax.nn.log_softmax(logits, axis=-1)
    target = jax.random.randint(k2, (N,), 0, C, dtype=jnp.int32)
    weight = jax.random.uniform(k3, (C,), dtype=jnp.float32, minval=0.5, maxval=1.5)
    trans_feat = jnp.zeros((2, 64, 64), jnp.float32)   # unused by forward

    loss = jax.block_until_ready(get_loss_pallas(pred, target, trans_feat, weight))
    ref = _nll_loss_ref(pred, target, weight)
    assert jnp.allclose(loss, ref, rtol=1e-5, atol=1e-5), (loss, ref)

    # Test 2: ragged N + ignore_index = -100 targets.
    N2 = 130
    logits2 = jax.random.normal(k1, (N2, C), dtype=jnp.float32)
    pred2 = jax.nn.log_softmax(logits2, axis=-1)
    target2 = jax.random.randint(k2, (N2,), 0, C, dtype=jnp.int32)
    target2 = target2.at[jnp.array([3, 77, 129])].set(-100)
    loss2 = jax.block_until_ready(get_loss_pallas(pred2, target2, trans_feat, weight))
    ref2 = _nll_loss_ref(pred2, target2, weight)
    assert jnp.allclose(loss2, ref2, rtol=1e-5, atol=1e-5), (loss2, ref2)

    # Test 3: non-power-of-two class count (class-dim pad path), aligned N.
    N3, C3 = 512, 13
    logits3 = jax.random.normal(k1, (N3, C3), dtype=jnp.float32)
    pred3 = jax.nn.log_softmax(logits3, axis=-1)
    target3 = jax.random.randint(k2, (N3,), 0, C3, dtype=jnp.int32)
    weight3 = jax.random.uniform(k3, (C3,), dtype=jnp.float32, minval=0.5, maxval=1.5)
    loss3 = jax.block_until_ready(get_loss_pallas(pred3, target3, trans_feat, weight3))
    ref3 = _nll_loss_ref(pred3, target3, weight3)
    assert jnp.allclose(loss3, ref3, rtol=1e-5, atol=1e-5), (loss3, ref3)

    print("KERNEL_OK")
</pallas_src>

<mosaic_0001>
module attributes {stable_mosaic.version = 11 : i64} {
  func.func @_nll_loss_kernel(%arg0: i32, %arg1: i32, %arg2: memref<32x128xf32, #tpu.memory_space<vmem>>, %arg3: memref<32x8xi8, #tpu.memory_space<vmem>>, %arg4: memref<8x128xf32, #tpu.memory_space<vmem>>, %arg5: memref<1x128xf32, #tpu.memory_space<vmem>>, %arg6: memref<1x128xf32, #tpu.memory_space<vmem>>, %arg7: memref<1x1xf32, #tpu.memory_space<vmem>>, %arg8: memref<1x1xf32, #tpu.memory_space<vmem>>, %arg9: memref<1x128xf32, #tpu.memory_space<vmem>>, %arg10: memref<1x128xf32, #tpu.memory_space<vmem>>) attributes {dimension_semantics = [#tpu.dimension_semantics<parallel>, #tpu.dimension_semantics<arbitrary>], iteration_bounds = array<i64: 1, 1>, scalar_prefetch = 0 : i64, scratch_operands = 2 : i64, tpu.core_type = #tpu.core_type<tc>, window_params = [{transform_indices = @transform_0, window_bounds = array<i64: 32, 128>}, {transform_indices = @transform_1, window_bounds = array<i64: 32, 8>}, {pipeline_mode = #tpu.pipeline_mode<synchronous>, transform_indices = @transform_2, window_bounds = array<i64: 8, 128>}, {pipeline_mode = #tpu.pipeline_mode<synchronous>, transform_indices = @transform_3, window_bounds = array<i64: 1, 128>}, {pipeline_mode = #tpu.pipeline_mode<synchronous>, transform_indices = @transform_4, window_bounds = array<i64: 1, 128>}, {transform_indices = @transform_5, window_bounds = array<i64: 1, 1>}, {transform_indices = @transform_6, window_bounds = array<i64: 1, 1>}]} {
    %c0_i32 = arith.constant 0 : i32
    %0 = arith.cmpi eq, %arg1, %c0_i32 : i32
    %1 = arith.extui %0 : i1 to i32
    %c0_i32_0 = arith.constant 0 : i32
    %2 = arith.cmpi ne, %1, %c0_i32_0 : i32
    scf.if %2 {
      %cst_21 = arith.constant 0.000000e+00 : f32
      %30 = vector.broadcast %cst_21 : f32 to vector<1x128xf32>
      %c0_22 = arith.constant 0 : index
      %c0_23 = arith.constant 0 : index
      %31 = vector.load %arg9[%c0_22, %c0_23] : memref<1x128xf32, #tpu.memory_space<vmem>>, vector<1x128xf32>
      tpu.vector_store %arg9[%c0_22, %c0_23], %30 {strides = array<i32>} : memref<1x128xf32, #tpu.memory_space<vmem>>, vector<1x128xf32>,
      %cst_24 = arith.constant 0.000000e+00 : f32
      %32 = vector.broadcast %cst_24 : f32 to vector<1x128xf32>
      %c0_25 = arith.constant 0 : index
      %c0_26 = arith.constant 0 : index
      %33 = vector.load %arg10[%c0_25, %c0_26] : memref<1x128xf32, #tpu.memory_space<vmem>>, vector<1x128xf32>
      tpu.vector_store %arg10[%c0_25, %c0_26], %32 {strides = array<i32>} : memref<1x128xf32, #tpu.memory_space<vmem>>, vector<1x128xf32>,
    } else {
    }
    %c0 = arith.constant 0 : index
    %c0_1 = arith.constant 0 : index
    %3 = vector.load %arg2[%c0, %c0_1] : memref<32x128xf32, #tpu.memory_space<vmem>>, vector<32x128xf32>
    %c0_2 = arith.constant 0 : index
    %c0_3 = arith.constant 0 : index
    %4 = vector.load %arg3[%c0_2, %c0_3] : memref<32x8xi8, #tpu.memory_space<vmem>>, vector<32x8xi8>
    %5 = arith.sitofp %4 : vector<32x8xi8> to vector<32x8xf32>
    %6 = arith.truncf %5 : vector<32x8xf32> to vector<32x8xbf16>
    %c0_4 = arith.constant 0 : index
    %c0_5 = arith.constant 0 : index
    %7 = vector.load %arg4[%c0_4, %c0_5] : memref<8x128xf32, #tpu.memory_space<vmem>>, vector<8x128xf32>
    %8 = arith.truncf %7 : vector<8x128xf32> to vector<8x128xbf16>
    %cst = arith.constant dense<0.000000e+00> : vector<32x128xf32>
    %9 = tpu.matmul %6, %8, %cst {dimension_numbers = #tpu.dot_dimension_numbers<[1], [0], [0], [1], [0, 0, 1, 1], [], []>} : vector<32x8xbf16>, vector<8x128xbf16>, vector<32x128xf32> -> vector<32x128xf32>
    %c0_6 = arith.constant 0 : index
    %c0_7 = arith.constant 0 : index
    %10 = vector.load %arg5[%c0_6, %c0_7] : memref<1x128xf32, #tpu.memory_space<vmem>>, vector<1x128xf32>
    %11 = vector.broadcast %10 : vector<1x128xf32> to vector<32x128xf32>
    %12 = arith.cmpf oeq, %9, %11 : vector<32x128xf32>
    %c0_8 = arith.constant 0 : index
    %c0_9 = arith.constant 0 : index
    %13 = vector.load %arg9[%c0_8, %c0_9] : memref<1x128xf32, #tpu.memory_space<vmem>>, vector<1x128xf32>
    %cst_10 = arith.constant 0.000000e+00 : f32
    %14 = vector.broadcast %cst_10 : f32 to vector<32x128xf32>
    %15 = arith.select %12, %3, %14 : vector<32x128xi1>, vector<32x128xf32>
    %cst_11 = arith.constant dense<0.000000e+00> : vector<128xf32>
    %16 = vector.multi_reduction <add>, %15, %cst_11 [0] : vector<32x128xf32> to vector<128xf32>
    %17 = vector.shape_cast %16 : vector<128xf32> to vector<1x128xf32>
    %18 = arith.addf %13, %17 : vector<1x128xf32>
    %c0_12 = arith.constant 0 : index
    %c0_13 = arith.constant 0 : index
    %19 = vector.load %arg9[%c0_12, %c0_13] : memref<1x128xf32, #tpu.memory_space<vmem>>, vector<1x128xf32>
    tpu.vector_store %arg9[%c0_12, %c0_13], %18 {strides = array<i32>} : memref<1x128xf32, #tpu.memory_space<vmem>>, vector<1x128xf32>,
    %c0_14 = arith.constant 0 : index
    %c0_15 = arith.constant 0 : index
    %20 = vector.load %arg10[%c0_14, %c0_15] : memref<1x128xf32, #tpu.memory_space<vmem>>, vector<1x128xf32>
    %21 = arith.extui %12 : vector<32x128xi1> to vector<32x128xi32>
    %22 = arith.sitofp %21 : vector<32x128xi32> to vector<32x128xf32>
    %cst_16 = arith.constant dense<0.000000e+00> : vector<128xf32>
    %23 = vector.multi_reduction <add>, %22, %cst_16 [0] : vector<32x128xf32> to vector<128xf32>
    %24 = vector.shape_cast %23 : vector<128xf32> to vector<1x128xf32>
    %25 = arith.addf %20, %24 : vector<1x128xf32>
    %c0_17 = arith.constant 0 : index
    %c0_18 = arith.constant 0 : index
    %26 = vector.load %arg10[%c0_17, %c0_18] : memref<1x128xf32, #tpu.memory_space<vmem>>, vector<1x128xf32>
    tpu.vector_store %arg10[%c0_17, %c0_18], %25 {strides = array<i32>} : memref<1x128xf32, #tpu.memory_space<vmem>>, vector<1x128xf32>,
    %c0_i32_19 = arith.constant 0 : i32
    %27 = arith.cmpi eq, %arg1, %c0_i32_19 : i32
    %28 = arith.extui %27 : i1 to i32
    %c0_i32_20 = arith.constant 0 : i32
    %29 = arith.cmpi ne, %28, %c0_i32_20 : i32
    scf.if %29 {
      %c0_21 = arith.constant 0 : index
      %c0_22 = arith.constant 0 : index
      %30 = vector.load %arg9[%c0_21, %c0_22] : memref<1x128xf32, #tpu.memory_space<vmem>>, vector<1x128xf32>
      %c0_23 = arith.constant 0 : index
      %c0_24 = arith.constant 0 : index
      %31 = vector.load %arg6[%c0_23, %c0_24] : memref<1x128xf32, #tpu.memory_space<vmem>>, vector<1x128xf32>
      %32 = arith.mulf %30, %31 : vector<1x128xf32>
      %33 = vector.shape_cast %32 : vector<1x128xf32> to vector<1x1x128xf32>
      %cst_25 = arith.constant dense<0.000000e+00> : vector<1xf32>
      %34 = vector.multi_reduction <add>, %33, %cst_25 [1, 2] : vector<1x1x128xf32> to vector<1xf32>
      %35 = vector.shape_cast %34 : vector<1xf32> to vector<1x1x1xf32>
      %36 = vector.extract %35[0, 0, 0] : f32 from vector<1x1x1xf32>
      %37 = vector.broadcast %36 : f32 to vector<1x1xf32>
      %c0_26 = arith.constant 0 : index
      %c0_27 = arith.constant 0 : index
      %38 = vector.load %arg7[%c0_26, %c0_27] : memref<1x1xf32, #tpu.memory_space<vmem>>, vector<1x1xf32>
      tpu.vector_store %arg7[%c0_26, %c0_27], %37 {strides = array<i32>} : memref<1x1xf32, #tpu.memory_space<vmem>>, vector<1x1xf32>,
      %c0_28 = arith.constant 0 : index
      %c0_29 = arith.constant 0 : index
      %39 = vector.load %arg10[%c0_28, %c0_29] : memref<1x128xf32, #tpu.memory_space<vmem>>, vector<1x128xf32>
      %c0_30 = arith.constant 0 : index
      %c0_31 = arith.constant 0 : index
      %40 = vector.load %arg6[%c0_30, %c0_31] : memref<1x128xf32, #tpu.memory_space<vmem>>, vector<1x128xf32>
      %41 = arith.mulf %39, %40 : vector<1x128xf32>
      %42 = vector.shape_cast %41 : vector<1x128xf32> to vector<1x1x128xf32>
      %cst_32 = arith.constant dense<0.000000e+00> : vector<1xf32>
      %43 = vector.multi_reduction <add>, %42, %cst_32 [1, 2] : vector<1x1x128xf32> to vector<1xf32>
      %44 = vector.shape_cast %43 : vector<1xf32> to vector<1x1x1xf32>
      %45 = vector.extract %44[0, 0, 0] : f32 from vector<1x1x1xf32>
      %46 = vector.broadcast %45 : f32 to vector<1x1xf32>
      %c0_33 = arith.constant 0 : index
      %c0_34 = arith.constant 0 : index
      %47 = vector.load %arg8[%c0_33, %c0_34] : memref<1x1xf32, #tpu.memory_space<vmem>>, vector<1x1xf32>
      tpu.vector_store %arg8[%c0_33, %c0_34], %46 {strides = array<i32>} : memref<1x1xf32, #tpu.memory_space<vmem>>, vector<1x1xf32>,
    } else {
    }
    return
  }
  func.func @transform_0(%arg0: i32, %arg1: i32) -> (i32, i32) {
    %c1_i32 = arith.constant 1 : i32
    %0 = arith.muli %arg0, %c1_i32 : i32
    %1 = arith.addi %0, %arg1 : i32
    %c0_i32 = arith.constant 0 : i32
    %c0_i32_0 = arith.constant 0 : i32
    return %1, %c0_i32 : i32, i32
  }
  func.func @transform_1(%arg0: i32, %arg1: i32) -> (i32, i32) {
    %c1_i32 = arith.constant 1 : i32
    %0 = arith.muli %arg0, %c1_i32 : i32
    %1 = arith.addi %0, %arg1 : i32
    %c0_i32 = arith.constant 0 : i32
    %c0_i32_0 = arith.constant 0 : i32
    return %1, %c0_i32 : i32, i32
  }
  func.func @transform_2(%arg0: i32, %arg1: i32) -> (i32, i32) {
    %c0_i32 = arith.constant 0 : i32
    %c0_i32_0 = arith.constant 0 : i32
    %c0_i32_1 = arith.constant 0 : i32
    return %c0_i32, %c0_i32_0 : i32, i32
  }
  func.func @transform_3(%arg0: i32, %arg1: i32) -> (i32, i32) {
    %c0_i32 = arith.constant 0 : i32
    %c0_i32_0 = arith.constant 0 : i32
    %c0_i32_1 = arith.constant 0 : i32
    return %c0_i32, %c0_i32_0 : i32, i32
  }
  func.func @transform_4(%arg0: i32, %arg1: i32) -> (i32, i32) {
    %c0_i32 = arith.constant 0 : i32
    %c0_i32_0 = arith.constant 0 : i32
    %c0_i32_1 = arith.constant 0 : i32
    return %c0_i32, %c0_i32_0 : i32, i32
  }
  func.func @transform_5(%arg0: i32, %arg1: i32) -> (i32, i32) {
    %c0_i32 = arith.constant 0 : i32
    %c0_i32_0 = arith.constant 0 : i32
    return %arg0, %c0_i32 : i32, i32
  }
  func.func @transform_6(%arg0: i32, %arg1: i32) -> (i32, i32) {
    %c0_i32 = arith.constant 0 : i32
    %c0_i32_0 = arith.constant 0 : i32
    return %arg0, %c0_i32 : i32, i32
  }
}

</mosaic_0001>

<bundles_post_ra>
// kernel: tpu_custom_call.1
= control target key start
LH: loop header
LB: loop body
LE: loop exit
PB: predicated region body
PF: predicated region fallthrough
CT: control target
= control target key end

     0   :  { %12 = vsyncpa [#allocation5], 0  ;;  %s478_s0 = inlined_call_operand.hbm [shape: f32[32,128], index: 0, kind: input, shape index: {}]   ;;  %s479_s1 = inlined_call_operand.vmem [shape: s8[32,8], index: 1, kind: input, shape index: {}]   ;;  %s480_s2 = inlined_call_operand.vmem [shape: f32[8,128], index: 2, kind: input, shape index: {}]   ;;  %s481_s3 = inlined_call_operand.vmem [shape: f32[1,128], index: 3, kind: input, shape index: {}]   ;;  %s482_s4 = inlined_call_operand.vmem [shape: f32[1,128], index: 4, kind: input, shape index: {}]   ;;  %s483_s5 = inlined_call_operand.hbm [shape: f32[1,1], index: 5, kind: output, shape index: {0}]   ;;  %s484_s6 = inlined_call_operand.hbm [shape: f32[1,1], index: 6, kind: output, shape index: {1}]  }
   0x1   :  { %13 = vsyncpa [#allocation6], 0 }
   0x2   :  { %14 = vsyncpa [#allocation9], 0  ;;  %s375_s21 = smov [#allocation4]   ;;  %s303_s25 = scalar_lea.hbm %s478_s0, 512 }
   0x3   :  { %s24_s22 = sshll.u32 %s375_s21, 4  ;;  %p304_p0 = scmp.ne.s32.totalorder %s478_s0, %s303_s25  ;;  %s25_s22 = int_to_ptr.vmem [resolvable:$true] %s24_s22 }
   0x4   :  { %p307_p1 = scmp.lt.u32.totalorder %s303_s25, %s478_s0 }
   0x6   :  { %p309_p2 = pnand %p307_p1, %p304_p0 }
   0x8   :  { %312 = shalt.err (!%p309_p2)
}
   0x9   :  { %s313_s30 = scalar_lea.vmem %s25_s22, 512  ;;  %p318_p4 = scmp.lt.s32.totalorder %s25_s22, %s25_s22 }
   0xa   :  { %p314_p3 = scmp.ne.s32.totalorder %s25_s22, %s313_s30  ;;  %p319_p5 = scmp.lt.s32.totalorder %s313_s30, %s313_s30 }
   0xc   :  { %p320_p6 = por %p319_p5, %p318_p4 }
   0xe   :  { %p321_p7 = pnand %p320_p6, %p314_p3 }
  0x10   :  { %324 = shalt.err (!%p321_p7)
}
  0x11   :  { %s376_s7 = smov 128   ;;  %s377_s8 = smov 8  }
  0x12   :  { %30 = dma.hbm_to_vmem [thread:$0]  %s478_s0, 512, %s25_s22, [#allocation5], %s376_s7, %s376_s7, %s377_s8  }
  0x13   :  { %369 = dma.done.wait [#allocation5], 512  }
  0x14   :  { %370 = vsyncadd [#allocation5], 4294966784  ;;  %v378_v0 = vmov 0.0   ;;  %v85_v1 = vld [vmem:[%s480_s2] sm:$0xff]  ;;  %vm104_vm0 = vcmask 1043456   ;;  %vm97_vm1 = vcmask 64512  }
  0x15   :  { %71 = vst [vmem:[#allocation2] sm:$0x1] %v378_v0  ;;  %72 = vst [vmem:[#allocation3] sm:$0x1] %v378_v0  ;;  %v77_v2 = vld [vmem:[%s479_s1] sm:$0x3]  ;;  %v86_v4 = vpack.c.bf16 %v85_v1, %v85_v1 }
  0x16   :  { %v78_v3 = vld [vmem:[%s479_s1 + $0x2] sm:$0x3]  ;;  %v81_v5 = vunpack.c.l.s8.bf16 %v77_v2  ;;  %v79_v7 = vld [vmem:[%s479_s1 + $0x4] sm:$0x3]  ;;  %v80_v8 = vld [vmem:[%s479_s1 + $0x6] sm:$0x3] }
  0x17   :  { %v82_v6 = vunpack.c.l.s8.bf16 %v78_v3  ;;  %v83_v9 = vunpack.c.l.s8.bf16 %v79_v7  ;;  %v84_v10 = vunpack.c.l.s8.bf16 %v80_v8  ;;  %292 = vmatprep.subr.msk.bf16.mxu0 %vm104_vm0, %v86_v4  ;;  %v106_v11 = vsel %vm104_vm0, %v86_v4, 0  ;;  %v278_v14 = vld [vmem:[%s481_s3] ss:$0 sm:$0xff]  ;;  %v73_v17 = vld [vmem:[#allocation4] sm:$0xff]  ;;  %v74_v19 = vld [vmem:[#allocation4 + $0x8] sm:$0xff]  ;;  %s380_s25 = smov [#allocation8]  }
  0x18   :  { %287 = vmatpush3.bf16.msra.mxu0 %v106_v11  ;;  %v75_v21 = vld [vmem:[#allocation4 + $0x10] sm:$0xff]  ;;  %v76_v26 = vld [vmem:[#allocation4 + $0x18] sm:$0xff]  ;;  %vm210_vm6 = vcmask 1040384   ;;  %vm222_vm7 = vcmask 0   ;;  %s255_s26 = sshll.u32 %s380_s25, 4  ;;  %s256_s26 = int_to_ptr.vmem [resolvable:$true] %s255_s26 }
  0x19   :  { %v274_v12 = vcombine.low %v81_v5, %v82_v6  ;;  %v275_v13 = vcombine.low %v83_v9, %v84_v10  ;;  %v208_v53 = vld [vmem:[%s482_s4] sm:$0x1] }
  0x1a   :  { %v225_v54 = vld [vmem:[%s482_s4] sm:$0x1]  ;;  %s379_s4 = smov [#allocation7]  }
  0x1b   :  { %288 = vmatprep.mubr.msk.bf16.mxu0 %vm97_vm1, %v274_v12  ;;  %s245_s23 = sshll.u32 %s379_s4, 4  ;;  %s246_s23 = int_to_ptr.vmem [resolvable:$true] %s245_s23 }
  0x1c   :  { %289 = vmatmul.mubr.msk.bf16.vlgmr.msra.gmra.mrb[0].mxu0 %vm97_vm1, %v275_v13  ;;  %v168_v47 = vld [vmem:[#allocation2] sm:$0x1]  ;;  %v184_v48 = vld [vmem:[#allocation3] sm:$0x1]  ;;  %s325_s27 = scalar_lea.vmem %s246_s23, 16  ;;  %s329_s28 = scalar_lea.vmem %s246_s23, 32 }
  0x1d   :  { %p326_p8 = scmp.ne.s32.totalorder %s246_s23, %s325_s27  ;;  %p330_p9 = scmp.lt.s32.totalorder %s246_s23, %s246_s23 }
  0x1e   :  { %p331_p10 = scmp.lt.s32.totalorder %s329_s28, %s325_s27 }
  0x20   :  { %p332_p11 = por %p331_p10, %p330_p9 }
  0x22   :  { %p333_p12 = pnand %p332_p11, %p326_p8 }
  0xef   :  { %v290_v15 = vpop.f32.mrb[0].mxu0 }
  0xf0   :  { %v142_v16 = vpop.f32.mrb[1].mxu0  ;;  %vm166_vm3 = vcmp.eq.f32.partialorder %v290_v15, %v278_v14 }
  0xf1   :  { %vm164_vm2 = vcmp.eq.f32.partialorder %v142_v16, %v278_v14  ;;  %v291_v18 = vpop.f32.mrb[2].mxu0  ;;  %v171_v29 = vsel %vm166_vm3, %v75_v21, 0.0  ;;  %v281_v30 = vsel %vm166_vm3, 1.0, %v378_v0 }
  0xf2   :  { %v145_v20 = vpop.f32.mrb[3].mxu0  ;;  %v169_v22 = vsel %vm164_vm2, %v73_v17, 0.0  ;;  %v279_v23 = vsel %vm164_vm2, 1.0, %v378_v0  ;;  %vm167_vm5 = vcmp.eq.f32.partialorder %v291_v18, %v278_v14 }
  0xf3   :  { %vm165_vm4 = vcmp.eq.f32.partialorder %v145_v20, %v278_v14  ;;  %v172_v33 = vsel %vm167_vm5, %v76_v26, 0.0  ;;  %v282_v34 = vsel %vm167_vm5, 1.0, %v378_v0 }
  0xf4   :  { %v170_v24 = vsel %vm165_vm4, %v74_v19, 0.0  ;;  %v280_v25 = vsel %vm165_vm4, 1.0, %v378_v0 }
  0xf5   :  { %v173_v27 = vadd.f32 %v170_v24, %v169_v22  ;;  %v193_v28 = vadd.f32 %v280_v25, %v279_v23 }
  0xf7   :  { %v174_v31 = vadd.f32 %v173_v27, %v171_v29  ;;  %v194_v32 = vadd.f32 %v281_v30, %v193_v28 }
  0xf9   :  { %v175_v35 = vadd.f32 %v174_v31, %v172_v33  ;;  %v195_v36 = vadd.f32 %v282_v34, %v194_v32 }
  0xfb   :  { %v176_v37 = vrot.slane %v175_v35, 4  ;;  %v196_v38 = vrot.slane %v195_v36, 4 }
  0xfd   :  { %v177_v39 = vadd.f32 %v176_v37, %v175_v35  ;;  %v197_v40 = vadd.f32 %v196_v38, %v195_v36 }
  0xff   :  { %v178_v41 = vrot.slane %v177_v39, 2  ;;  %v198_v42 = vrot.slane %v197_v40, 2 }
 0x101   :  { %v179_v43 = vadd.f32 %v178_v41, %v177_v39  ;;  %v199_v44 = vadd.f32 %v198_v42, %v197_v40 }
 0x103   :  { %v180_v45 = vrot.slane %v179_v43, 1  ;;  %v200_v46 = vrot.slane %v199_v44, 1 }
 0x105   :  { %v181_v49 = vadd.f32 %v180_v45, %v179_v43  ;;  %v201_v50 = vadd.f32 %v200_v46, %v199_v44 }
 0x107   :  { %v182_v51 = vadd.f32 %v181_v49, %v168_v47  ;;  %v202_v52 = vadd.f32 %v201_v50, %v184_v48 }
 0x109   :  { %183 = vst [vmem:[#allocation2] sm:$0x1] %v182_v51  ;;  %203 = vst [vmem:[#allocation3] sm:$0x1] %v202_v52 }
 0x110   :  { %v207_v55 = vld [vmem:[#allocation2] sm:$0x1]  ;;  %v224_v56 = vld [vmem:[#allocation3] sm:$0x1] }
 0x111   :  { %v209_v57 = vmul.f32 %v208_v53, %v207_v55  ;;  %v226_v59 = vmul.f32 %v225_v54, %v224_v56 }
 0x113   :  { %v211_v58 = vsel %vm210_vm6, %v209_v57, 0.0  ;;  %v227_v60 = vsel %vm210_vm6, %v226_v59, 0.0 }
 0x114   :  { %212 = vadd.xlane.f32.xlu0 %v211_v58 }
 0x118   :  { %228 = vadd.xlane.f32.xlu0 %v227_v60 }
 0x1a1   :  { %v213_v61 = vpop.xlane.xlu0 %212 }
 0x1a2   :  { %v214_v62 = vrot.slane %v213_v61, 4 }
 0x1a4   :  { %v215_v63 = vadd.f32 %v214_v62, %v213_v61 }
 0x1a5   :  { %v229_v0 = vpop.xlane.xlu0 %228 }
 0x1a6   :  { %v216_v1 = vrot.slane %v215_v63, 2  ;;  %v230_v2 = vrot.slane %v229_v0, 4 }
 0x1a8   :  { %v231_v3 = vadd.f32 %v230_v2, %v229_v0  ;;  %v217_v4 = vadd.f32 %v216_v1, %v215_v63 }
 0x1aa   :  { %v232_v5 = vrot.slane %v231_v3, 2  ;;  %v218_v6 = vrot.slane %v217_v4, 1 }
 0x1ac   :  { %v233_v7 = vadd.f32 %v232_v5, %v231_v3  ;;  %v219_v8 = vadd.f32 %v218_v6, %v217_v4 }
 0x1ae   :  { %293 = vpush %v219_v8  ;;  %v234_v9 = vrot.slane %v233_v7, 1 }
 0x1b0   :  { %v235_v10 = vadd.f32 %v234_v9, %v233_v7 }
 0x1b2   :  { %295 = vpush %v235_v10 }
 0x1df   :  { %s294_s24 = spop %293 }
 0x1e0   :  { %v221_v11 = vstv %s294_s24 }
 0x1e1   :  { %223 = vst.msk [vmem:[#allocation7] sm:$0x1] %vm222_vm7, %v221_v11 }
 0x1e2   :  { %336 = shalt.err (!%p333_p12)
}
 0x1e3   :  { %s337_s7 = scalar_lea.hbm %s483_s5, 16 }
 0x1e4   :  { %p338_p13 = scmp.ne.s32.totalorder %s483_s5, %s337_s7  ;;  %p341_p0 = scmp.lt.u32.totalorder %s337_s7, %s483_s5 }
 0x1e6   :  { %p343_p1 = pnand %p341_p0, %p338_p13 }
 0x1e8   :  { %346 = shalt.err (!%p343_p1)
}
 0x1e9   :  { %248 = dma.vmem_to_hbm [thread:$0]  %s246_s23, 16, %s483_s5, [#allocation6]  }
 0x1ea   :  { %s296_s14 = spop %295  ;;  %s347_s15 = scalar_lea.vmem %s256_s26, 16 }
 0x1eb   :  { %v237_v12 = vstv %s296_s14  ;;  %p348_p2 = scmp.ne.s32.totalorder %s256_s26, %s347_s15  ;;  %s351_s16 = scalar_lea.vmem %s256_s26, 32 }
 0x1ec   :  { %238 = vst.msk [vmem:[#allocation8] sm:$0x1] %vm222_vm7, %v237_v12  ;;  %p352_p3 = scmp.lt.s32.totalorder %s256_s26, %s256_s26  ;;  %p353_p4 = scmp.lt.s32.totalorder %s351_s16, %s347_s15 }
 0x1ee   :  { %p354_p5 = por %p353_p4, %p352_p3 }
 0x1f0   :  { %p355_p6 = pnand %p354_p5, %p348_p2 }
 0x1f2   :  { %358 = shalt.err (!%p355_p6)
}
 0x1f3   :  { %s359_s18 = scalar_lea.hbm %s484_s6, 16 }
 0x1f4   :  { %p360_p7 = scmp.ne.s32.totalorder %s484_s6, %s359_s18  ;;  %p363_p8 = scmp.lt.u32.totalorder %s359_s18, %s484_s6 }
 0x1f6   :  { %p365_p9 = pnand %p363_p8, %p360_p7 }
 0x1f8   :  { %368 = shalt.err (!%p365_p9)
}
 0x1f9   :  { %258 = dma.vmem_to_hbm [thread:$0]  %s256_s26, 16, %s484_s6, [#allocation9]  }
 0x1fa   :  { %371 = dma.done.wait [#allocation6], 16  }
 0x1fb   :  { %372 = vsyncadd [#allocation6], 4294967280 }
 0x1fc   :  { %373 = dma.done.wait [#allocation9], 16  }
 0x1fd   :  { %374 = vsyncadd [#allocation9], 4294967280 }
 0x1fe   :  { %265 = vsyncpa [#allocation5], 1 }
 0x1ff   :  { %266 = vsyncpa [#allocation6], 1 }
 0x200   :  { %267 = vsyncpa [#allocation9], 1 }

</bundles_post_ra>
